<compile_context>
chip_gen: v7x
topology: tpu7x:2x2x1
jax: 0.10.0
libtpu: 0.0.40
codegen_flags: <defaults>
</compile_context>

<pallas_src>
import functools

import numpy as np

import jax
import jax.numpy as jnp
from jax.experimental import pallas as pl
from jax.experimental.pallas import tpu as pltpu


_TAPS = tuple((dy, dx) for dy in (-1, 0, 1) for dx in (-1, 0, 1))


def _round_up(x, m):
    return ((x + m - 1) // m) * m


# ------------------------------ Pallas kernel -------------------------------


def _bottleneck_kernel(x_ref, w1_ref, w2_ref, w3_ref, b_ref, m_ref,
                       o_ref, patch_ref, *, W, P, Cout, tap_pad,
                       off_b2, off_b3):
    """Fused bottleneck on a (Cin, BW) channels-major slab (BW = imgs*H*W)."""
    x_t = x_ref[...]                                        # (Cin, BW) f32
    BW = x_t.shape[-1]

    # --- conv1 (1x1, BN scale pre-folded) + bias + relu ----------------------
    h1 = jnp.dot(w1_ref[...], x_t, preferred_element_type=jnp.float32)
    h1 = jnp.maximum(h1 + b_ref[pl.ds(0, P), :], 0.0)       # (P, BW)

    # --- conv2 (3x3, stride=1, pad=1) + bias + relu ---------------------------
    # In-kernel im2col with 8-sublane-aligned tap stores.  The pad rows of
    # each tap group must be zero (their w2 columns are zero too, but stale
    # VMEM could hold NaN); zeroing every step is ~36 stores and keeps the
    # kernel safe when the grid axis is sharded across TensorCores.
    if tap_pad != P:
        patch_ref[...] = jnp.zeros_like(patch_ref)

    m_row = 0
    for t, (dy, dx) in enumerate(_TAPS):
        off = dy * W + dx
        if off == 0:
            tap = h1                                        # center tap: always valid
        else:
            tap = pltpu.roll(h1, shift=(-off) % BW, axis=1)
            tap = tap * m_ref[pl.ds(m_row, 1), :]           # precomputed boundary mask
            m_row += 1
        patch_ref[pl.ds(t * tap_pad, P), :] = tap           # aligned sublane store

    h2 = jnp.dot(w2_ref[...], patch_ref[...],
                 preferred_element_type=jnp.float32)        # (P, BW)
    h2 = jnp.maximum(h2 + b_ref[pl.ds(off_b2, P), :], 0.0)

    # --- conv3 (1x1) + bias + identity residual + relu ------------------------
    h3 = jnp.dot(w3_ref[...], h2, preferred_element_type=jnp.float32)
    o_ref[...] = jnp.maximum(h3 + b_ref[pl.ds(off_b3, Cout), :] + x_t,
                             0.0).astype(o_ref.dtype)


# ----------------------------- param preparation ------------------------------


def _fold_bn(gamma, beta, mean, var, eps=1e-5):
    scale = gamma / jnp.sqrt(var + eps)
    return scale, beta - mean * scale


def prepare_params(raw):
    """Fold eval-mode BN into conv weights / biases and pack for the kernel.

    Runs once, outside the jitted forward.
    """
    w1, w2, w3 = raw["w1"], raw["w2"], raw["w3"]   # (P,Cin), (P,P,3,3) OIHW, (Cout,P)
    P, _ = w1.shape
    Cout = w3.shape[0]
    tap_pad = _round_up(P, 8)

    s1, b1 = _fold_bn(*raw["bn1"])
    s2, b2 = _fold_bn(*raw["bn2"])
    s3, b3 = _fold_bn(*raw["bn3"])

    w1f = w1 * s1[:, None]
    w3f = w3 * s3[:, None]

    # Tap-stacked, 8-sublane-padded 3x3 weight: column block t holds tap t's
    # input channels; the padded columns stay zero.
    w2f = jnp.zeros((P, 9 * tap_pad), jnp.float32)
    for t, (dy, dx) in enumerate(_TAPS):
        w2f = w2f.at[:, t * tap_pad:t * tap_pad + P].set(w2[:, :, dy + 1, dx + 1])
    w2f = w2f * s2[:, None]

    # Pack the three biases into one 8-aligned column vector.
    off_b2 = _round_up(P, 8)
    off_b3 = off_b2 + _round_up(P, 8)
    rows = _round_up(off_b3 + Cout, 8)
    b_packed = jnp.zeros((rows, 1), jnp.float32)
    b_packed = b_packed.at[0:P, 0].set(b1)
    b_packed = b_packed.at[off_b2:off_b2 + P, 0].set(b2)
    b_packed = b_packed.at[off_b3:off_b3 + Cout, 0].set(b3)

    return dict(w1=w1f, w2=w2f, w3=w3f, b=b_packed)


def _boundary_masks(H, W, imgs_per_block):
    """(8, imgs_per_block*H*W) f32 masks for the non-center 3x3 taps."""
    HW = H * W
    yy, xx = np.divmod(np.arange(HW, dtype=np.int64), W)
    rows = []
    for dy, dx in _TAPS:
        if dy == 0 and dx == 0:
            continue
        valid = ((yy + dy >= 0) & (yy + dy < H) &
                 (xx + dx >= 0) & (xx + dx < W))
        rows.append(valid.astype(np.float32))
    m = np.stack(rows, axis=0)                               # (8, HW)
    return jnp.asarray(np.tile(m, (1, imgs_per_block)))      # (8, block_w)


def _num_grid_blocks(n):
    """One grid step per TensorCore: v7x has 2 TCs/chip, v5e/v6e have 1."""
    try:
        kind = jax.devices()[0].device_kind.lower()
    except Exception:
        kind = ""
    n_tc = 2 if ("v7" in kind or "tpu7" in kind) else 1
    return n_tc if (n >= n_tc and n % n_tc == 0) else 1


# --------------------------- Bottleneck forward ------------------------------


def bottleneck_forward(x_nchw, prep, *, num_blocks=None):
    """Bottleneck forward (stride=1, downsample=None, drop_rate=0, eval BN)."""
    N, Cin, H, W = x_nchw.shape
    P = prep["w1"].shape[0]
    Cout = prep["w3"].shape[0]
    assert Cin == Cout == 4 * P, "identity residual requires inplanes==planes*4"
    HW = H * W
    tap_pad = _round_up(P, 8)
    off_b2 = _round_up(P, 8)
    off_b3 = off_b2 + _round_up(P, 8)

    if num_blocks is None:
        num_blocks = _num_grid_blocks(N)
    assert N % num_blocks == 0
    imgs_per_block = N // num_blocks
    BW = imgs_per_block * HW                 # lane extent per grid step

    # Channels on sublanes, (batch*pixels) on lanes: one transpose in the
    # wrapper gives a lane-dense slab and a single matmul per layer.  The
    # out-of-image masks make the circular roll safe across image boundaries.
    x_flat = jnp.transpose(x_nchw.reshape(N, Cin, HW), (1, 0, 2)).reshape(
        Cin, N * HW)
    masks = _boundary_masks(H, W, imgs_per_block)

    kernel = functools.partial(_bottleneck_kernel, W=W, P=P, Cout=Cout,
                               tap_pad=tap_pad, off_b2=off_b2, off_b3=off_b3)

    def x_map(i):                    # lane-axis block per grid step
        return (0, i)

    def const_map(i):                # params stay resident across grid steps
        return (0, 0)

    out_flat = pl.pallas_call(
        kernel,
        out_shape=jax.ShapeDtypeStruct((Cout, N * HW), jnp.float32),
        grid=(num_blocks,),
        in_specs=[
            pl.BlockSpec((Cin, BW), x_map),             # x slab
            pl.BlockSpec(prep["w1"].shape, const_map),  # w1 (BN folded)
            pl.BlockSpec(prep["w2"].shape, const_map),  # w2 (tap-stacked, padded)
            pl.BlockSpec(prep["w3"].shape, const_map),  # w3 (BN folded)
            pl.BlockSpec(prep["b"].shape, const_map),   # packed biases
            pl.BlockSpec(masks.shape, const_map),       # boundary masks
        ],
        out_specs=pl.BlockSpec((Cout, BW), x_map),
        scratch_shapes=[pltpu.VMEM((9 * tap_pad, BW), jnp.float32)],
        compiler_params=pltpu.CompilerParams(
            dimension_semantics=("parallel",)),
    )(x_flat, prep["w1"], prep["w2"], prep["w3"], prep["b"], masks)

    return jnp.transpose(out_flat.reshape(Cout, N, HW), (1, 0, 2)).reshape(
        N, Cout, H, W)


# ----------------------------- parameter setup -------------------------------


def make_raw_params(key, inplanes, planes):
    ks = jax.random.split(key, 6)
    P, Cin, Cout = planes, inplanes, planes * 4

    w1 = 0.1 * jax.random.normal(ks[0], (P, Cin), jnp.float32)        # 1x1
    w2 = 0.1 * jax.random.normal(ks[1], (P, P, 3, 3), jnp.float32)    # OIHW
    w3 = 0.1 * jax.random.normal(ks[2], (Cout, P), jnp.float32)       # 1x1

    def bn(k, c):
        kg, kb, km, kv = jax.random.split(k, 4)
        gamma = 1.0 + 0.1 * jax.random.normal(kg, (c,), jnp.float32)
        beta = 0.1 * jax.random.normal(kb, (c,), jnp.float32)
        mean = 0.1 * jax.random.normal(km, (c,), jnp.float32)
        var = 0.5 + jnp.abs(jax.random.normal(kv, (c,), jnp.float32))
        return (gamma, beta, mean, var)

    return dict(w1=w1, w2=w2, w3=w3,
                bn1=bn(ks[3], P), bn2=bn(ks[4], P), bn3=bn(ks[5], Cout))


# ------------------------------ reference check ------------------------------


def bottleneck_reference(x_nchw, raw):
    """Pure-JAX reference (same math, no Pallas, no BN folding into weights)."""
    x = jnp.transpose(x_nchw, (0, 2, 3, 1))                            # NHWC
    s1, b1 = _fold_bn(*raw["bn1"])
    s2, b2 = _fold_bn(*raw["bn2"])
    s3, b3 = _fold_bn(*raw["bn3"])

    h = jnp.einsum("nhwc,pc->nhwp", x, raw["w1"])
    h = jnp.maximum(h * s1 + b1, 0.0)

    w2_hwio = jnp.transpose(raw["w2"], (2, 3, 1, 0))                   # OIHW->HWIO
    h = jax.lax.conv_general_dilated(
        h, w2_hwio, window_strides=(1, 1), padding="SAME",
        dimension_numbers=("NHWC", "HWIO", "NHWC"))
    h = jnp.maximum(h * s2 + b2, 0.0)

    h = jnp.einsum("nhwp,cp->nhwc", h, raw["w3"])
    h = jnp.maximum(h * s3 + b3 + x, 0.0)
    return jnp.transpose(h, (0, 3, 1, 2))


# ----------------------------------- main -------------------------------------


if __name__ == "__main__":
    key = jax.random.PRNGKey(0)
    k_x, k_p = jax.random.split(key)

    inplanes, planes = 16, 4          # inplanes == planes * expansion
    N, H, W = 2, 16, 16
    x = jax.random.normal(k_x, (N, inplanes, H, W), jnp.float32)       # NCHW
    raw = make_raw_params(k_p, inplanes, planes)
    prep = prepare_params(raw)        # BN folded / packed once, outside jit

    out = jax.jit(bottleneck_forward)(x, prep)
    out = jax.block_until_ready(out)

    ref = bottleneck_reference(x, raw)
    assert out.shape == (N, planes * 4, H, W)
    assert jnp.allclose(out, ref, atol=1e-4, rtol=1e-4), "mismatch vs reference"

    print("KERNEL_OK")
</pallas_src>

<mosaic_0001>
module attributes {stable_mosaic.version = 11 : i64} {
  func.func @_bottleneck_kernel(%arg0: i32, %arg1: memref<16x512xf32, #tpu.memory_space<vmem>>, %arg2: memref<4x16xf32, #tpu.memory_space<vmem>>, %arg3: memref<4x72xf32, #tpu.memory_space<vmem>>, %arg4: memref<16x4xf32, #tpu.memory_space<vmem>>, %arg5: memref<32x1xf32, #tpu.memory_space<vmem>>, %arg6: memref<8x512xf32, #tpu.memory_space<vmem>>, %arg7: memref<16x512xf32, #tpu.memory_space<vmem>>, %arg8: memref<72x512xf32, #tpu.memory_space<vmem>>) attributes {dimension_semantics = [#tpu.dimension_semantics<parallel>], iteration_bounds = array<i64: 1>, scalar_prefetch = 0 : i64, scratch_operands = 1 : i64, tpu.core_type = #tpu.core_type<tc>, window_params = [{transform_indices = @transform_0, window_bounds = array<i64: 16, 512>}, {pipeline_mode = #tpu.pipeline_mode<synchronous>, transform_indices = @transform_1, window_bounds = array<i64: 4, 16>}, {pipeline_mode = #tpu.pipeline_mode<synchronous>, transform_indices = @transform_2, window_bounds = array<i64: 4, 72>}, {pipeline_mode = #tpu.pipeline_mode<synchronous>, transform_indices = @transform_3, window_bounds = array<i64: 16, 4>}, {pipeline_mode = #tpu.pipeline_mode<synchronous>, transform_indices = @transform_4, window_bounds = array<i64: 32, 1>}, {pipeline_mode = #tpu.pipeline_mode<synchronous>, transform_indices = @transform_5, window_bounds = array<i64: 8, 512>}, {transform_indices = @transform_6, window_bounds = array<i64: 16, 512>}]} {
    %c0 = arith.constant 0 : index
    %c0_0 = arith.constant 0 : index
    %0 = vector.load %arg1[%c0, %c0_0] : memref<16x512xf32, #tpu.memory_space<vmem>>, vector<16x512xf32>
    %c0_1 = arith.constant 0 : index
    %c0_2 = arith.constant 0 : index
    %1 = vector.load %arg2[%c0_1, %c0_2] : memref<4x16xf32, #tpu.memory_space<vmem>>, vector<4x16xf32>
    %cst = arith.constant dense<0.000000e+00> : vector<4x512xf32>
    %2 = tpu.matmul %1, %0, %cst {dimension_numbers = #tpu.dot_dimension_numbers<[1], [0], [0], [1], [0, 0, 1, 1], [], []>} : vector<4x16xf32>, vector<16x512xf32>, vector<4x512xf32> -> vector<4x512xf32>
    %c0_3 = arith.constant 0 : index
    %c0_4 = arith.constant 0 : index
    %3 = vector.load %arg5[%c0_3, %c0_4] : memref<32x1xf32, #tpu.memory_space<vmem>>, vector<4x1xf32>
    %4 = vector.broadcast %3 : vector<4x1xf32> to vector<4x512xf32>
    %5 = arith.addf %2, %4 : vector<4x512xf32>
    %cst_5 = arith.constant 0.000000e+00 : f32
    %6 = vector.broadcast %cst_5 : f32 to vector<4x512xf32>
    %7 = arith.maximumf %5, %6 : vector<4x512xf32>
    %cst_6 = arith.constant 0.000000e+00 : f32
    %8 = vector.broadcast %cst_6 : f32 to vector<72x512xf32>
    %c0_7 = arith.constant 0 : index
    %c0_8 = arith.constant 0 : index
    %9 = vector.load %arg8[%c0_7, %c0_8] : memref<72x512xf32, #tpu.memory_space<vmem>>, vector<72x512xf32>
    tpu.vector_store %arg8[%c0_7, %c0_8], %8 {strides = array<i32>} : memref<72x512xf32, #tpu.memory_space<vmem>>, vector<72x512xf32>,
    %c17_i32 = arith.constant 17 : i32
    %10 = tpu.dynamic_rotate %7 by %c17_i32 dim 1 : vector<4x512xf32>, i32 -> vector<4x512xf32>
    %c0_9 = arith.constant 0 : index
    %c0_10 = arith.constant 0 : index
    %11 = vector.load %arg6[%c0_9, %c0_10] : memref<8x512xf32, #tpu.memory_space<vmem>>, vector<1x512xf32>
    %12 = vector.broadcast %11 : vector<1x512xf32> to vector<4x512xf32>
    %13 = arith.mulf %10, %12 : vector<4x512xf32>
    %c0_11 = arith.constant 0 : index
    %c0_12 = arith.constant 0 : index
    %14 = vector.load %arg8[%c0_11, %c0_12] : memref<72x512xf32, #tpu.memory_space<vmem>>, vector<4x512xf32>
    tpu.vector_store %arg8[%c0_11, %c0_12], %13 {strides = array<i32>} : memref<72x512xf32, #tpu.memory_space<vmem>>, vector<4x512xf32>,
    %c16_i32 = arith.constant 16 : i32
    %15 = tpu.dynamic_rotate %7 by %c16_i32 dim 1 : vector<4x512xf32>, i32 -> vector<4x512xf32>
    %c1 = arith.constant 1 : index
    %c0_13 = arith.constant 0 : index
    %16 = vector.load %arg6[%c1, %c0_13] : memref<8x512xf32, #tpu.memory_space<vmem>>, vector<1x512xf32>
    %17 = vector.broadcast %16 : vector<1x512xf32> to vector<4x512xf32>
    %18 = arith.mulf %15, %17 : vector<4x512xf32>
    %c8 = arith.constant 8 : index
    %c0_14 = arith.constant 0 : index
    %19 = vector.load %arg8[%c8, %c0_14] : memref<72x512xf32, #tpu.memory_space<vmem>>, vector<4x512xf32>
    tpu.vector_store %arg8[%c8, %c0_14], %18 {strides = array<i32>} : memref<72x512xf32, #tpu.memory_space<vmem>>, vector<4x512xf32>,
    %c15_i32 = arith.constant 15 : i32
    %20 = tpu.dynamic_rotate %7 by %c15_i32 dim 1 : vector<4x512xf32>, i32 -> vector<4x512xf32>
    %c2 = arith.constant 2 : index
    %c0_15 = arith.constant 0 : index
    %21 = vector.load %arg6[%c2, %c0_15] : memref<8x512xf32, #tpu.memory_space<vmem>>, vector<1x512xf32>
    %22 = vector.broadcast %21 : vector<1x512xf32> to vector<4x512xf32>
    %23 = arith.mulf %20, %22 : vector<4x512xf32>
    %c16 = arith.constant 16 : index
    %c0_16 = arith.constant 0 : index
    %24 = vector.load %arg8[%c16, %c0_16] : memref<72x512xf32, #tpu.memory_space<vmem>>, vector<4x512xf32>
    tpu.vector_store %arg8[%c16, %c0_16], %23 {strides = array<i32>} : memref<72x512xf32, #tpu.memory_space<vmem>>, vector<4x512xf32>,
    %c1_i32 = arith.constant 1 : i32
    %25 = tpu.dynamic_rotate %7 by %c1_i32 dim 1 : vector<4x512xf32>, i32 -> vector<4x512xf32>
    %c3 = arith.constant 3 : index
    %c0_17 = arith.constant 0 : index
    %26 = vector.load %arg6[%c3, %c0_17] : memref<8x512xf32, #tpu.memory_space<vmem>>, vector<1x512xf32>
    %27 = vector.broadcast %26 : vector<1x512xf32> to vector<4x512xf32>
    %28 = arith.mulf %25, %27 : vector<4x512xf32>
    %c24 = arith.constant 24 : index
    %c0_18 = arith.constant 0 : index
    %29 = vector.load %arg8[%c24, %c0_18] : memref<72x512xf32, #tpu.memory_space<vmem>>, vector<4x512xf32>
    tpu.vector_store %arg8[%c24, %c0_18], %28 {strides = array<i32>} : memref<72x512xf32, #tpu.memory_space<vmem>>, vector<4x512xf32>,
    %c32 = arith.constant 32 : index
    %c0_19 = arith.constant 0 : index
    %30 = vector.load %arg8[%c32, %c0_19] : memref<72x512xf32, #tpu.memory_space<vmem>>, vector<4x512xf32>
    tpu.vector_store %arg8[%c32, %c0_19], %7 {strides = array<i32>} : memref<72x512xf32, #tpu.memory_space<vmem>>, vector<4x512xf32>,
    %c511_i32 = arith.constant 511 : i32
    %31 = tpu.dynamic_rotate %7 by %c511_i32 dim 1 : vector<4x512xf32>, i32 -> vector<4x512xf32>
    %c4 = arith.constant 4 : index
    %c0_20 = arith.constant 0 : index
    %32 = vector.load %arg6[%c4, %c0_20] : memref<8x512xf32, #tpu.memory_space<vmem>>, vector<1x512xf32>
    %33 = vector.broadcast %32 : vector<1x512xf32> to vector<4x512xf32>
    %34 = arith.mulf %31, %33 : vector<4x512xf32>
    %c40 = arith.constant 40 : index
    %c0_21 = arith.constant 0 : index
    %35 = vector.load %arg8[%c40, %c0_21] : memref<72x512xf32, #tpu.memory_space<vmem>>, vector<4x512xf32>
    tpu.vector_store %arg8[%c40, %c0_21], %34 {strides = array<i32>} : memref<72x512xf32, #tpu.memory_space<vmem>>, vector<4x512xf32>,
    %c497_i32 = arith.constant 497 : i32
    %36 = tpu.dynamic_rotate %7 by %c497_i32 dim 1 : vector<4x512xf32>, i32 -> vector<4x512xf32>
    %c5 = arith.constant 5 : index
    %c0_22 = arith.constant 0 : index
    %37 = vector.load %arg6[%c5, %c0_22] : memref<8x512xf32, #tpu.memory_space<vmem>>, vector<1x512xf32>
    %38 = vector.broadcast %37 : vector<1x512xf32> to vector<4x512xf32>
    %39 = arith.mulf %36, %38 : vector<4x512xf32>
    %c48 = arith.constant 48 : index
    %c0_23 = arith.constant 0 : index
    %40 = vector.load %arg8[%c48, %c0_23] : memref<72x512xf32, #tpu.memory_space<vmem>>, vector<4x512xf32>
    tpu.vector_store %arg8[%c48, %c0_23], %39 {strides = array<i32>} : memref<72x512xf32, #tpu.memory_space<vmem>>, vector<4x512xf32>,
    %c496_i32 = arith.constant 496 : i32
    %41 = tpu.dynamic_rotate %7 by %c496_i32 dim 1 : vector<4x512xf32>, i32 -> vector<4x512xf32>
    %c6 = arith.constant 6 : index
    %c0_24 = arith.constant 0 : index
    %42 = vector.load %arg6[%c6, %c0_24] : memref<8x512xf32, #tpu.memory_space<vmem>>, vector<1x512xf32>
    %43 = vector.broadcast %42 : vector<1x512xf32> to vector<4x512xf32>
    %44 = arith.mulf %41, %43 : vector<4x512xf32>
    %c56 = arith.constant 56 : index
    %c0_25 = arith.constant 0 : index
    %45 = vector.load %arg8[%c56, %c0_25] : memref<72x512xf32, #tpu.memory_space<vmem>>, vector<4x512xf32>
    tpu.vector_store %arg8[%c56, %c0_25], %44 {strides = array<i32>} : memref<72x512xf32, #tpu.memory_space<vmem>>, vector<4x512xf32>,
    %c495_i32 = arith.constant 495 : i32
    %46 = tpu.dynamic_rotate %7 by %c495_i32 dim 1 : vector<4x512xf32>, i32 -> vector<4x512xf32>
    %c7 = arith.constant 7 : index
    %c0_26 = arith.constant 0 : index
    %47 = vector.load %arg6[%c7, %c0_26] : memref<8x512xf32, #tpu.memory_space<vmem>>, vector<1x512xf32>
    %48 = vector.broadcast %47 : vector<1x512xf32> to vector<4x512xf32>
    %49 = arith.mulf %46, %48 : vector<4x512xf32>
    %c64 = arith.constant 64 : index
    %c0_27 = arith.constant 0 : index
    %50 = vector.load %arg8[%c64, %c0_27] : memref<72x512xf32, #tpu.memory_space<vmem>>, vector<4x512xf32>
    tpu.vector_store %arg8[%c64, %c0_27], %49 {strides = array<i32>} : memref<72x512xf32, #tpu.memory_space<vmem>>, vector<4x512xf32>,
    %c0_28 = arith.constant 0 : index
    %c0_29 = arith.constant 0 : index
    %51 = vector.load %arg3[%c0_28, %c0_29] : memref<4x72xf32, #tpu.memory_space<vmem>>, vector<4x72xf32>
    %c0_30 = arith.constant 0 : index
    %c0_31 = arith.constant 0 : index
    %52 = vector.load %arg8[%c0_30, %c0_31] : memref<72x512xf32, #tpu.memory_space<vmem>>, vector<72x512xf32>
    %cst_32 = arith.constant dense<0.000000e+00> : vector<4x512xf32>
    %53 = tpu.matmul %51, %52, %cst_32 {dimension_numbers = #tpu.dot_dimension_numbers<[1], [0], [0], [1], [0, 0, 1, 1], [], []>} : vector<4x72xf32>, vector<72x512xf32>, vector<4x512xf32> -> vector<4x512xf32>
    %c8_33 = arith.constant 8 : index
    %c0_34 = arith.constant 0 : index
    %54 = vector.load %arg5[%c8_33, %c0_34] : memref<32x1xf32, #tpu.memory_space<vmem>>, vector<4x1xf32>
    %55 = vector.broadcast %54 : vector<4x1xf32> to vector<4x512xf32>
    %56 = arith.addf %53, %55 : vector<4x512xf32>
    %cst_35 = arith.constant 0.000000e+00 : f32
    %57 = vector.broadcast %cst_35 : f32 to vector<4x512xf32>
    %58 = arith.maximumf %56, %57 : vector<4x512xf32>
    %c0_36 = arith.constant 0 : index
    %c0_37 = arith.constant 0 : index
    %59 = vector.load %arg4[%c0_36, %c0_37] : memref<16x4xf32, #tpu.memory_space<vmem>>, vector<16x4xf32>
    %cst_38 = arith.constant dense<0.000000e+00> : vector<16x512xf32>
    %60 = tpu.matmul %59, %58, %cst_38 {dimension_numbers = #tpu.dot_dimension_numbers<[1], [0], [0], [1], [0, 0, 1, 1], [], []>} : vector<16x4xf32>, vector<4x512xf32>, vector<16x512xf32> -> vector<16x512xf32>
    %c16_39 = arith.constant 16 : index
    %c0_40 = arith.constant 0 : index
    %61 = vector.load %arg5[%c16_39, %c0_40] : memref<32x1xf32, #tpu.memory_space<vmem>>, vector<16x1xf32>
    %62 = vector.broadcast %61 : vector<16x1xf32> to vector<16x512xf32>
    %63 = arith.addf %60, %62 : vector<16x512xf32>
    %64 = arith.addf %63, %0 : vector<16x512xf32>
    %cst_41 = arith.constant 0.000000e+00 : f32
    %65 = vector.broadcast %cst_41 : f32 to vector<16x512xf32>
    %66 = arith.maximumf %64, %65 : vector<16x512xf32>
    %c0_42 = arith.constant 0 : index
    %c0_43 = arith.constant 0 : index
    %67 = vector.load %arg7[%c0_42, %c0_43] : memref<16x512xf32, #tpu.memory_space<vmem>>, vector<16x512xf32>
    tpu.vector_store %arg7[%c0_42, %c0_43], %66 {strides = array<i32>} : memref<16x512xf32, #tpu.memory_space<vmem>>, vector<16x512xf32>,
    return
  }
  func.func @transform_0(%arg0: i32) -> (i32, i32) {
    %c0_i32 = arith.constant 0 : i32
    %c0_i32_0 = arith.constant 0 : i32
    return %c0_i32, %arg0 : i32, i32
  }
  func.func @transform_1(%arg0: i32) -> (i32, i32) {
    %c0_i32 = arith.constant 0 : i32
    %c0_i32_0 = arith.constant 0 : i32
    %c0_i32_1 = arith.constant 0 : i32
    return %c0_i32, %c0_i32_0 : i32, i32
  }
  func.func @transform_2(%arg0: i32) -> (i32, i32) {
    %c0_i32 = arith.constant 0 : i32
    %c0_i32_0 = arith.constant 0 : i32
    %c0_i32_1 = arith.constant 0 : i32
    return %c0_i32, %c0_i32_0 : i32, i32
  }
  func.func @transform_3(%arg0: i32) -> (i32, i32) {
    %c0_i32 = arith.constant 0 : i32
    %c0_i32_0 = arith.constant 0 : i32
    %c0_i32_1 = arith.constant 0 : i32
    return %c0_i32, %c0_i32_0 : i32, i32
  }
  func.func @transform_4(%arg0: i32) -> (i32, i32) {
    %c0_i32 = arith.constant 0 : i32
    %c0_i32_0 = arith.constant 0 : i32
    %c0_i32_1 = arith.constant 0 : i32
    return %c0_i32, %c0_i32_0 : i32, i32
  }
  func.func @transform_5(%arg0: i32) -> (i32, i32) {
    %c0_i32 = arith.constant 0 : i32
    %c0_i32_0 = arith.constant 0 : i32
    %c0_i32_1 = arith.constant 0 : i32
    return %c0_i32, %c0_i32_0 : i32, i32
  }
  func.func @transform_6(%arg0: i32) -> (i32, i32) {
    %c0_i32 = arith.constant 0 : i32
    %c0_i32_0 = arith.constant 0 : i32
    return %c0_i32, %arg0 : i32, i32
  }
}

</mosaic_0001>

<bundles_post_ra>
// kernel: bottleneck_forward.1
= control target key start
LH: loop header
LB: loop body
LE: loop exit
PB: predicated region body
PF: predicated region fallthrough
CT: control target
= control target key end

     0   :  { %v1061_v3 = vmov 0.0   ;;  %v1062_v8 = vmov 0   ;;  %vm38_vm0 = vcmask 130048   ;;  %s1065_s17 = smov 15   ;;  %s1066_s18 = smov 1   ;;  %v232_v32 = vlaneseq  ;;  %s1416_s0 = inlined_call_operand.vmem [shape: f32[16,512], index: 0, kind: input, shape index: {}]   ;;  %s1417_s4 = inlined_call_operand.vmem [shape: f32[32,1], index: 4, kind: input, shape index: {}]   ;;  %s1418_s1 = inlined_call_operand.vmem [shape: f32[4,16], index: 1, kind: input, shape index: {}]   ;;  %s1419_s5 = inlined_call_operand.vmem [shape: f32[8,512], index: 5, kind: input, shape index: {}]   ;;  %s1420_s2 = inlined_call_operand.vmem [shape: f32[4,72], index: 2, kind: input, shape index: {}]   ;;  %s1421_s3 = inlined_call_operand.vmem [shape: f32[16,4], index: 3, kind: input, shape index: {}]   ;;  %s1422_s6 = inlined_call_operand.vmem [shape: f32[16,512], index: 6, kind: output, shape index: {}]  }
   0x1   :  { %v1109_v0 = vld [vmem:[%s1416_s0 + $0x8] sm:$0xff]  ;;  %v1119_v2 = vld [vmem:[%s1416_s0 + $0x18] sm:$0xff]  ;;  %106 = vmatprep.mubr.f32.mxu0 %v1061_v3  ;;  %188 = vst [vmem:[#allocation2] sm:$0xff] %v1061_v3  ;;  %189 = vst [vmem:[#allocation2 + $0x8] sm:$0xff] %v1061_v3  ;;  %177 = vmatprep.mubr.f32.mxu1 %v1061_v3  ;;  %s1067_s19 = smov 127   ;;  %s1068_s20 = smov 113  }
   0x2   :  { %v1114_v1 = vld [vmem:[%s1416_s0 + $0x28] sm:$0xff]  ;;  %190 = vst [vmem:[#allocation2 + $0x10] sm:$0xff] %v1061_v3  ;;  %191 = vst [vmem:[#allocation2 + $0x18] sm:$0xff] %v1061_v3  ;;  %v1164_v5 = vld [vmem:[%s1416_s0 + $0x38] sm:$0xff]  ;;  %1059 = vset.pattern.permute.xlu0 %v1062_v8  ;;  %1060 = vset.pattern.permute.xlu1 %v1062_v8  ;;  %s1069_s21 = smov 112   ;;  %s1070_s22 = smov 111  }
   0x3   :  { %192 = vst [vmem:[#allocation2 + $0x20] sm:$0xff] %v1061_v3  ;;  %193 = vst [vmem:[#allocation2 + $0x28] sm:$0xff] %v1061_v3  ;;  %v1009_v4 = vpack.c.bf16 %v1114_v1, %v1109_v0  ;;  %v1169_v6 = vld [vmem:[%s1416_s0] sm:$0xff]  ;;  %v1013_v9 = vpack.c.bf16 %v1164_v5, %v1119_v2  ;;  %v1183_v11 = vld [vmem:[%s1416_s0 + $0x10] sm:$0xff]  ;;  %v242_v33 = vshrl.u32 %v232_v32, 7  ;;  %v1213_v34 = vand.u32 127, %v232_v32 }
   0x4   :  { %194 = vst [vmem:[#allocation2 + $0x30] sm:$0xff] %v1061_v3  ;;  %195 = vst [vmem:[#allocation2 + $0x38] sm:$0xff] %v1061_v3  ;;  %v1174_v7 = vld [vmem:[%s1416_s0 + $0x20] sm:$0xff]  ;;  %v1188_v12 = vld [vmem:[%s1416_s0 + $0x30] sm:$0xff]  ;;  %s1063_s0 = smov 17   ;;  %vm624_vm9 = vcmask 588800  }
   0x5   :  { %196 = vst [vmem:[#allocation2 + $0x40] sm:$0xff] %v1061_v3  ;;  %197 = vst [vmem:[#allocation2 + $0x48] sm:$0xff] %v1061_v3  ;;  %v1011_v10 = vpack.c.bf16 %v1174_v7, %v1169_v6  ;;  %1010 = vmatprep.subr.bf16.mxu0 %v1009_v4  ;;  %v1015_v13 = vpack.c.bf16 %v1188_v12, %v1183_v11  ;;  %v32_v14 = vld [vmem:[%s1417_s4] sm:$0xf]  ;;  %1014 = vmatprep.subr.bf16.mxu1 %v1013_v9  ;;  %v776_v29 = vld [vmem:[%s1417_s4 + $0x10] sm:$0xff]  ;;  %v1215_v35 = vsub.s32 0, %v242_v33 }
   0x6   :  { %198 = vst [vmem:[#allocation2 + $0x50] sm:$0xff] %v1061_v3  ;;  %199 = vst [vmem:[#allocation2 + $0x58] sm:$0xff] %v1061_v3  ;;  %v31_v15 = vld [vmem:[%s1418_s1] sm:$0xf]  ;;  %35 = vperm.xlu0 %1059, %v32_v14   ;;  %s1064_s1 = smov 16   ;;  %v777_v31 = vld [vmem:[%s1417_s4 + $0x18] sm:$0xff] }
   0x7   :  { %200 = vst [vmem:[#allocation2 + $0x60] sm:$0xff] %v1061_v3  ;;  %201 = vst [vmem:[#allocation2 + $0x68] sm:$0xff] %v1061_v3  ;;  %1012 = vmatpush1.bf16.msra.mxu0 %v1011_v10  ;;  %1016 = vmatpush1.bf16.msra.mxu1 %v1015_v13  ;;  %v618_v30 = vld [vmem:[%s1417_s4 + $0x8] sm:$0xf]  ;;  %v1217_v36 = vsub.s32 3, %v242_v33  ;;  %vm234_vm1 = vcmp.lt.s32.totalorder %v1213_v34, 17 }
   0x8   :  { %202 = vst [vmem:[#allocation2 + $0x70] sm:$0xff] %v1061_v3  ;;  %203 = vst [vmem:[#allocation2 + $0x78] sm:$0xff] %v1061_v3  ;;  %v1222_v37 = vld [vmem:[%s1419_s5] ss:$8 sm:$0xf]  ;;  %v1233_v42 = vsub.s32 1, %v242_v33 }
   0x9   :  { %204 = vst [vmem:[#allocation2 + $0x80] sm:$0xff] %v1061_v3  ;;  %205 = vst [vmem:[#allocation2 + $0x88] sm:$0xff] %v1061_v3  ;;  %v244_v40 = vrot.slane %v1222_v37, %v1215_v35  ;;  %v256_v41 = vrot.slane %v1222_v37, %v1217_v36  ;;  %v1235_v43 = vsub.s32 2, %v242_v33  ;;  %v992_v44 = vld [vmem:[%s1419_s5 + $0x1] ss:$8 sm:$0xf] }
   0xa   :  { %206 = vst [vmem:[#allocation2 + $0x90] sm:$0xff] %v1061_v3  ;;  %207 = vst [vmem:[#allocation2 + $0x98] sm:$0xff] %v1061_v3  ;;  %990 = vmatmul.mubr.msk.f32.vlgmr.msra.gmra.mrb[0].mxu0 %vm38_vm0, %v31_v15  ;;  %991 = vmatmul.mubr.msk.f32.vlgmr.msra.gmra.mrb[0].mxu1 %vm38_vm0, %v31_v15  ;;  %vm277_vm2 = vcmp.lt.s32.totalorder %v1213_v34, 16  ;;  %v292_v51 = vrot.slane %v992_v44, %v1233_v42  ;;  %v288_v58 = vrot.slane %v992_v44, %v1215_v35  ;;  %v993_v61 = vld [vmem:[%s1419_s5 + $0x2] ss:$8 sm:$0xf] }
   0xb   :  { %208 = vst [vmem:[#allocation2 + $0xa0] sm:$0xff] %v1061_v3  ;;  %209 = vst [vmem:[#allocation2 + $0xa8] sm:$0xff] %v1061_v3  ;;  %692 = vmatprep.mubr.f32.mxu0 %v1061_v3  ;;  %763 = vmatprep.mubr.f32.mxu1 %v1061_v3  ;;  %v296_v52 = vrot.slane %v992_v44, %v1235_v43  ;;  %v300_v59 = vrot.slane %v992_v44, %v1217_v36  ;;  %vm321_vm3 = vcmp.lt.s32.totalorder %v1213_v34, 15  ;;  %vm795_vm10 = vcmask 1043456  }
   0xc   :  { %210 = vst [vmem:[#allocation2 + $0xb0] sm:$0xff] %v1061_v3  ;;  %211 = vst [vmem:[#allocation2 + $0xb8] sm:$0xff] %v1061_v3  ;;  %v336_v13 = vrot.slane %v993_v61, %v1233_v42  ;;  %v340_v14 = vrot.slane %v993_v61, %v1235_v43  ;;  %vm365_vm4 = vcmp.lt.s32.totalorder %v1213_v34, 1  ;;  %vm413_vm5 = vcmp.lt.s32.totalorder %v1213_v34, 127 }
   0xd   :  { %212 = vst [vmem:[#allocation2 + $0xc0] sm:$0xff] %v1061_v3  ;;  %213 = vst [vmem:[#allocation2 + $0xc8] sm:$0xff] %v1061_v3  ;;  %vm457_vm6 = vcmp.lt.s32.totalorder %v1213_v34, 113  ;;  %vm501_vm7 = vcmp.lt.s32.totalorder %v1213_v34, 112  ;;  %vm545_vm8 = vcmp.lt.s32.totalorder %v1213_v34, 111  ;;  %vm788_vm11 = vcmask 31744  }
   0xe   :  { %214 = vst [vmem:[#allocation2 + $0xd0] sm:$0xff] %v1061_v3  ;;  %215 = vst [vmem:[#allocation2 + $0xd8] sm:$0xff] %v1061_v3 }
   0xf   :  { %216 = vst [vmem:[#allocation2 + $0xe0] sm:$0xff] %v1061_v3  ;;  %217 = vst [vmem:[#allocation2 + $0xe8] sm:$0xff] %v1061_v3 }
  0x10   :  { %218 = vst [vmem:[#allocation2 + $0xf0] sm:$0xff] %v1061_v3  ;;  %219 = vst [vmem:[#allocation2 + $0xf8] sm:$0xff] %v1061_v3 }
  0x11   :  { %220 = vst [vmem:[#allocation2 + $0x100] sm:$0xff] %v1061_v3  ;;  %221 = vst [vmem:[#allocation2 + $0x108] sm:$0xff] %v1061_v3 }
  0x12   :  { %222 = vst [vmem:[#allocation2 + $0x110] sm:$0xff] %v1061_v3  ;;  %223 = vst [vmem:[#allocation2 + $0x118] sm:$0xff] %v1061_v3 }
  0x85   :  { %v36_v16 = vpop.permute.xlu0 %35 }
  0xdd   :  { %v108_v17 = vpop.f32.mrb[0].mxu0  ;;  %v179_v19 = vpop.f32.mrb[0].mxu1 }
  0xde   :  { %v109_v18 = vadd.f32 %v108_v17, %v36_v16  ;;  %v110_v20 = vpop.f32.mrb[1].mxu0  ;;  %v180_v21 = vadd.f32 %v179_v19, %v36_v16  ;;  %v181_v23 = vpop.f32.mrb[1].mxu1 }
  0xdf   :  { %v111_v22 = vadd.f32 %v110_v20, %v36_v16  ;;  %v182_v25 = vadd.f32 %v181_v23, %v36_v16  ;;  %v332_v20 = vrot.slane %v993_v61, %v1215_v35  ;;  %v994_v23 = vld [vmem:[%s1419_s5 + $0x3] ss:$8 sm:$0xf] }
  0xe0   :  { %v184_v24 = vmax.f32 %v109_v18, 0.0  ;;  %v186_v26 = vmax.f32 %v180_v21, 0.0  ;;  %v344_v21 = vrot.slane %v993_v61, %v1217_v36 }
  0xe1   :  { %v185_v27 = vmax.f32 %v111_v22, 0.0  ;;  %v187_v28 = vmax.f32 %v182_v25, 0.0 }
  0xe2   :  { %401 = vst [vmem:[#allocation2 + $0x80] sm:$0xf] %v184_v24  ;;  %224 = vrot.lane.b32.xlu0 %v184_v24, %s1063_s0  ;;  %403 = vst [vmem:[#allocation2 + $0x90] sm:$0xf] %v186_v26  ;;  %228 = vrot.lane.b32.xlu1 %v186_v26, %s1063_s0 }
  0xe3   :  { %402 = vst [vmem:[#allocation2 + $0x88] sm:$0xf] %v185_v27  ;;  %404 = vst [vmem:[#allocation2 + $0x98] sm:$0xf] %v187_v28 }
  0xe6   :  { %230 = vrot.lane.b32.xlu0 %v187_v28, %s1063_s0  ;;  %269 = vrot.lane.b32.xlu1 %v184_v24, %s1064_s1 }
  0xea   :  { %271 = vrot.lane.b32.xlu0 %v185_v27, %s1064_s1  ;;  %273 = vrot.lane.b32.xlu1 %v186_v26, %s1064_s1 }
  0xee   :  { %275 = vrot.lane.b32.xlu0 %v187_v28, %s1064_s1  ;;  %313 = vrot.lane.b32.xlu1 %v184_v24, %s1065_s17 }
  0xf2   :  { %315 = vrot.lane.b32.xlu0 %v185_v27, %s1065_s17  ;;  %317 = vrot.lane.b32.xlu1 %v186_v26, %s1065_s17 }
  0xf6   :  { %319 = vrot.lane.b32.xlu0 %v187_v28, %s1065_s17  ;;  %357 = vrot.lane.b32.xlu1 %v184_v24, %s1066_s18 }
  0xfa   :  { %359 = vrot.lane.b32.xlu0 %v185_v27, %s1066_s18  ;;  %361 = vrot.lane.b32.xlu1 %v186_v26, %s1066_s18 }
  0xfe   :  { %363 = vrot.lane.b32.xlu0 %v187_v28, %s1066_s18  ;;  %405 = vrot.lane.b32.xlu1 %v184_v24, %s1067_s19 }
 0x102   :  { %407 = vrot.lane.b32.xlu0 %v185_v27, %s1067_s19  ;;  %409 = vrot.lane.b32.xlu1 %v186_v26, %s1067_s19 }
 0x106   :  { %411 = vrot.lane.b32.xlu0 %v187_v28, %s1067_s19  ;;  %449 = vrot.lane.b32.xlu1 %v184_v24, %s1068_s20 }
 0x10a   :  { %451 = vrot.lane.b32.xlu0 %v185_v27, %s1068_s20  ;;  %226 = vrot.lane.b32.xlu1 %v185_v27, %s1063_s0 }
 0x10e   :  { %455 = vrot.lane.b32.xlu0 %v187_v28, %s1068_s20  ;;  %453 = vrot.lane.b32.xlu1 %v186_v26, %s1068_s20 }
 0x112   :  { %495 = vrot.lane.b32.xlu0 %v185_v27, %s1069_s21  ;;  %493 = vrot.lane.b32.xlu1 %v184_v24, %s1069_s21 }
 0x116   :  { %499 = vrot.lane.b32.xlu0 %v187_v28, %s1069_s21  ;;  %497 = vrot.lane.b32.xlu1 %v186_v26, %s1069_s21 }
 0x11a   :  { %539 = vrot.lane.b32.xlu0 %v185_v27, %s1070_s22  ;;  %537 = vrot.lane.b32.xlu1 %v184_v24, %s1070_s22 }
 0x11e   :  { %543 = vrot.lane.b32.xlu0 %v187_v28, %s1070_s22  ;;  %541 = vrot.lane.b32.xlu1 %v186_v26, %s1070_s22 }
 0x122   :  { %780 = vperm.xlu0 %1059, %v776_v29   ;;  %621 = vperm.xlu1 %1060, %v618_v30   ;;  %v380_v30 = vrot.slane %v994_v23, %v1233_v42 }
 0x126   :  { %785 = vperm.xlu1 %1060, %v777_v31   ;;  %v384_v31 = vrot.slane %v994_v23, %v1235_v43 }
 0x154   :  { %v1224_v38 = vpop.permute.xlu0 %224  ;;  %v1226_v39 = vpop.permute.xlu1 %228 }
 0x158   :  { %v231_v45 = vpop.permute.xlu0 %230  ;;  %v270_v46 = vpop.permute.xlu1 %269 }
 0x159   :  { %v235_v47 = vsel %vm234_vm1, %v1226_v39, %v231_v45  ;;  %v238_v48 = vsel %vm234_vm1, %v231_v45, %v1224_v38 }
 0x15a   :  { %v261_v49 = vmul.f32 %v244_v40, %v238_v48  ;;  %v264_v50 = vmul.f32 %v256_v41, %v235_v47  ;;  %v376_v48 = vrot.slane %v994_v23, %v1215_v35 }
 0x15c   :  { %265 = vst [vmem:[#allocation2] sm:$0xf] %v261_v49  ;;  %268 = vst [vmem:[#allocation2 + $0x18] sm:$0xf] %v264_v50  ;;  %v272_v53 = vpop.permute.xlu0 %271  ;;  %v274_v54 = vpop.permute.xlu1 %273  ;;  %v388_v49 = vrot.slane %v994_v23, %v1217_v36 }
 0x15d   :  { %v280_v55 = vsel %vm277_vm2, %v270_v46, %v272_v53  ;;  %v279_v56 = vsel %vm277_vm2, %v272_v53, %v274_v54 }
 0x15e   :  { %v306_v57 = vmul.f32 %v292_v51, %v280_v55  ;;  %v307_v60 = vmul.f32 %v296_v52, %v279_v56  ;;  %v995_v51 = vld [vmem:[%s1419_s5 + $0x4] ss:$8 sm:$0xf] }
 0x160   :  { %310 = vst [vmem:[#allocation2 + $0x28] sm:$0xf] %v306_v57  ;;  %v276_v62 = vpop.permute.xlu0 %275  ;;  %311 = vst [vmem:[#allocation2 + $0x30] sm:$0xf] %v307_v60  ;;  %v314_v63 = vpop.permute.xlu1 %313 }
 0x161   :  { %v278_v4 = vsel %vm277_vm2, %v274_v54, %v276_v62  ;;  %v281_v8 = vsel %vm277_vm2, %v276_v62, %v270_v46 }
 0x162   :  { %v305_v9 = vmul.f32 %v288_v58, %v281_v8  ;;  %v308_v10 = vmul.f32 %v300_v59, %v278_v4  ;;  %v424_v58 = vrot.slane %v995_v51, %v1215_v35  ;;  %v428_v59 = vrot.slane %v995_v51, %v1233_v42 }
 0x163   :  { %v585_v32 = vld [vmem:[#allocation2 + $0x18] sm:$0xff]  ;;  %v432_v8 = vrot.slane %v995_v51, %v1235_v43 }
 0x164   :  { %309 = vst [vmem:[#allocation2 + $0x20] sm:$0xf] %v305_v9  ;;  %312 = vst [vmem:[#allocation2 + $0x38] sm:$0xf] %v308_v10  ;;  %v316_v15 = vpop.permute.xlu0 %315  ;;  %v318_v16 = vpop.permute.xlu1 %317  ;;  %v436_v9 = vrot.slane %v995_v51, %v1217_v36 }
 0x165   :  { %v324_v17 = vsel %vm321_vm3, %v314_v63, %v316_v15  ;;  %v323_v18 = vsel %vm321_vm3, %v316_v15, %v318_v16  ;;  %v1341_v51 = vld [vmem:[%s1419_s5 + $0x7] ss:$8 sm:$0xf] }
 0x166   :  { %v350_v19 = vmul.f32 %v336_v13, %v324_v17  ;;  %v351_v22 = vmul.f32 %v340_v14, %v323_v18  ;;  %v996_v13 = vld [vmem:[%s1419_s5 + $0x5] ss:$8 sm:$0xf] }
 0x168   :  { %354 = vst [vmem:[#allocation2 + $0x48] sm:$0xf] %v350_v19  ;;  %v320_v24 = vpop.permute.xlu0 %319  ;;  %355 = vst [vmem:[#allocation2 + $0x50] sm:$0xf] %v351_v22  ;;  %v358_v25 = vpop.permute.xlu1 %357  ;;  %v252_v22 = vrot.slane %v1222_v37, %v1235_v43 }
 0x169   :  { %v322_v26 = vsel %vm321_vm3, %v318_v16, %v320_v24  ;;  %v325_v27 = vsel %vm321_vm3, %v320_v24, %v314_v63 }
 0x16a   :  { %v349_v28 = vmul.f32 %v332_v20, %v325_v27  ;;  %v352_v29 = vmul.f32 %v344_v21, %v322_v26  ;;  %v468_v20 = vrot.slane %v996_v13, %v1215_v35  ;;  %v248_v21 = vrot.slane %v1222_v37, %v1233_v42 }
 0x16b   :  { %v589_v33 = vld [vmem:[#allocation2 + $0x38] sm:$0xff] }
 0x16c   :  { %353 = vst [vmem:[#allocation2 + $0x40] sm:$0xf] %v349_v28  ;;  %356 = vst [vmem:[#allocation2 + $0x58] sm:$0xf] %v352_v29  ;;  %v360_v40 = vpop.permute.xlu0 %359  ;;  %v1033_v41 = vpack.c.bf16 %v589_v33, %v585_v32  ;;  %v362_v44 = vpop.permute.xlu1 %361  ;;  %v480_v29 = vrot.slane %v996_v13, %v1217_v36  ;;  %v476_v32 = vrot.slane %v996_v13, %v1235_v43 }
 0x16d   :  { %v368_v45 = vsel %vm365_vm4, %v358_v25, %v360_v40  ;;  %v367_v46 = vsel %vm365_vm4, %v360_v40, %v362_v44  ;;  %v997_v40 = vld [vmem:[%s1419_s5 + $0x6] ss:$8 sm:$0xf] }
 0x16e   :  { %v394_v47 = vmul.f32 %v380_v30, %v368_v45  ;;  %1034 = vmatprep.subr.bf16.mxu1 %v1033_v41  ;;  %v395_v50 = vmul.f32 %v384_v31, %v367_v46  ;;  %v472_v31 = vrot.slane %v996_v13, %v1233_v42 }
 0x170   :  { %398 = vst [vmem:[#allocation2 + $0x68] sm:$0xf] %v394_v47  ;;  %v364_v52 = vpop.permute.xlu0 %363  ;;  %399 = vst [vmem:[#allocation2 + $0x70] sm:$0xf] %v395_v50  ;;  %v406_v53 = vpop.permute.xlu1 %405 }
 0x171   :  { %v366_v54 = vsel %vm365_vm4, %v362_v44, %v364_v52  ;;  %v369_v55 = vsel %vm365_vm4, %v364_v52, %v358_v25 }
 0x172   :  { %v393_v56 = vmul.f32 %v376_v48, %v369_v55  ;;  %v396_v57 = vmul.f32 %v388_v49, %v366_v54  ;;  %v512_v48 = vrot.slane %v997_v40, %v1215_v35  ;;  %v582_v54 = vld [vmem:[#allocation2] sm:$0xff] }
 0x173   :  { %v586_v55 = vld [vmem:[#allocation2 + $0x20] sm:$0xff] }
 0x174   :  { %397 = vst [vmem:[#allocation2 + $0x60] sm:$0xf] %v393_v56  ;;  %400 = vst [vmem:[#allocation2 + $0x78] sm:$0xf] %v396_v57  ;;  %v408_v60 = vpop.permute.xlu0 %407  ;;  %v410_v61 = vpop.permute.xlu1 %409  ;;  %v516_v57 = vrot.slane %v997_v40, %v1233_v42 }
 0x175   :  { %v416_v62 = vsel %vm413_vm5, %v406_v53, %v408_v60  ;;  %v415_v63 = vsel %vm413_vm5, %v408_v60, %v410_v61  ;;  %v588_v60 = vld [vmem:[#allocation2 + $0x30] sm:$0xff] }
 0x176   :  { %v441_v4 = vmul.f32 %v424_v58, %v416_v62  ;;  %v442_v10 = vmul.f32 %v428_v59, %v415_v63  ;;  %v520_v58 = vrot.slane %v997_v40, %v1235_v43  ;;  %v587_v59 = vld [vmem:[#allocation2 + $0x28] sm:$0xff] }
 0x178   :  { %445 = vst [vmem:[#allocation2 + $0xa0] sm:$0xf] %v441_v4  ;;  %v412_v14 = vpop.permute.xlu0 %411  ;;  %446 = vst [vmem:[#allocation2 + $0xa8] sm:$0xf] %v442_v10  ;;  %v450_v15 = vpop.permute.xlu1 %449 }
 0x179   :  { %v414_v16 = vsel %vm413_vm5, %v410_v61, %v412_v14  ;;  %v417_v17 = vsel %vm413_vm5, %v412_v14, %v406_v53  ;;  %v524_v53 = vrot.slane %v997_v40, %v1217_v36 }
 0x17a   :  { %v443_v18 = vmul.f32 %v432_v8, %v414_v16  ;;  %v444_v19 = vmul.f32 %v436_v9, %v417_v17  ;;  %v595_v8 = vld [vmem:[#allocation2 + $0x68] sm:$0xff]  ;;  %v556_v9 = vrot.slane %v1341_v51, %v1215_v35  ;;  %v1019_v16 = vpack.c.bf16 %v586_v55, %v582_v54  ;;  %v593_v17 = vld [vmem:[#allocation2 + $0x58] sm:$0xff] }
 0x17b   :  { %v597_v61 = vld [vmem:[#allocation2 + $0x78] sm:$0xff] }
 0x17c   :  { %447 = vst [vmem:[#allocation2 + $0xb0] sm:$0xf] %v443_v18  ;;  %448 = vst [vmem:[#allocation2 + $0xb8] sm:$0xf] %v444_v19  ;;  %v452_v23 = vpop.permute.xlu0 %451  ;;  %v227_v24 = vpop.permute.xlu1 %226 }
 0x17d   :  { %v460_v25 = vsel %vm457_vm6, %v450_v15, %v452_v23  ;;  %v236_v26 = vsel %vm234_vm1, %v227_v24, %v1226_v39  ;;  %v237_v27 = vsel %vm234_vm1, %v1224_v38, %v227_v24 }
 0x17e   :  { %v485_v28 = vmul.f32 %v468_v20, %v460_v25  ;;  %v262_v30 = vmul.f32 %v248_v21, %v237_v27  ;;  %v263_v37 = vmul.f32 %v252_v22, %v236_v26  ;;  %v1037_v21 = vpack.c.bf16 %v597_v61, %v593_v17  ;;  %v591_v22 = vld [vmem:[#allocation2 + $0x48] sm:$0xff]  ;;  %v594_v26 = vld [vmem:[#allocation2 + $0x60] sm:$0xff] }
 0x17f   :  { %v1021_v25 = vpack.c.bf16 %v595_v8, %v591_v22  ;;  %v581_v17 = vld [vmem:[%s1420_s2] sm:$0xf] }
 0x180   :  { %489 = vst [vmem:[#allocation2 + $0xc0] sm:$0xf] %v485_v28  ;;  %v456_v33 = vpop.permute.xlu0 %455  ;;  %266 = vst [vmem:[#allocation2 + $0x8] sm:$0xf] %v262_v30  ;;  %v454_v39 = vpop.permute.xlu1 %453  ;;  %v603_v30 = vld [vmem:[#allocation2 + $0xa8] sm:$0xff] }
 0x181   :  { %267 = vst [vmem:[#allocation2 + $0x10] sm:$0xf] %v263_v37  ;;  %v461_v38 = vsel %vm457_vm6, %v456_v33, %v450_v15  ;;  %v459_v41 = vsel %vm457_vm6, %v452_v23, %v454_v39  ;;  %v458_v44 = vsel %vm457_vm6, %v454_v39, %v456_v33  ;;  %v596_v23 = vld [vmem:[#allocation2 + $0x70] sm:$0xff]  ;;  %v601_v33 = vld [vmem:[#allocation2 + $0x98] sm:$0xff] }
 0x182   :  { %v488_v45 = vmul.f32 %v480_v29, %v461_v38  ;;  %v486_v46 = vmul.f32 %v472_v31, %v459_v41  ;;  %v487_v47 = vmul.f32 %v476_v32, %v458_v44  ;;  %v592_v29 = vld [vmem:[#allocation2 + $0x50] sm:$0xff]  ;;  %v590_v32 = vld [vmem:[#allocation2 + $0x40] sm:$0xff]  ;;  %v599_v41 = vld [vmem:[#allocation2 + $0x88] sm:$0xff]  ;;  %v568_v44 = vrot.slane %v1341_v51, %v1217_v36 }
 0x183   :  { %v605_v27 = vld [vmem:[#allocation2 + $0xb8] sm:$0xff]  ;;  %v1039_v31 = vpack.c.bf16 %v596_v23, %v592_v29  ;;  %v1023_v39 = vpack.c.bf16 %v594_v26, %v590_v32 }
 0x184   :  { %492 = vst [vmem:[#allocation2 + $0xd8] sm:$0xf] %v488_v45  ;;  %v496_v49 = vpop.permute.xlu0 %495  ;;  %490 = vst [vmem:[#allocation2 + $0xc8] sm:$0xf] %v486_v46  ;;  %v494_v50 = vpop.permute.xlu1 %493  ;;  %v1041_v38 = vpack.c.bf16 %v605_v27, %v601_v33  ;;  %v604_v45 = vld [vmem:[#allocation2 + $0xb0] sm:$0xff]  ;;  %v775_v33 = vld [vmem:[%s1421_s3 + $0x8] sm:$0xff] }
 0x185   :  { %491 = vst [vmem:[#allocation2 + $0xd0] sm:$0xf] %v487_v47  ;;  %v504_v52 = vsel %vm501_vm7, %v494_v50, %v496_v49  ;;  %v560_v47 = vrot.slane %v1341_v51, %v1233_v42 }
 0x186   :  { %v529_v56 = vmul.f32 %v512_v48, %v504_v52  ;;  %v1025_v48 = vpack.c.bf16 %v603_v30, %v599_v41 }
 0x187   :  { %v583_v63 = vld [vmem:[#allocation2 + $0x8] sm:$0xff]  ;;  %v606_v34 = vld [vmem:[#allocation2 + $0xc0] sm:$0xff] }
 0x188   :  { %v500_v62 = vpop.permute.xlu0 %499  ;;  %v584_v4 = vld [vmem:[#allocation2 + $0x10] sm:$0xff]  ;;  %533 = vst [vmem:[#allocation2 + $0xe0] sm:$0xf] %v529_v56  ;;  %v498_v10 = vpop.permute.xlu1 %497  ;;  %v1017_v14 = vpack.c.bf16 %v587_v59, %v583_v63  ;;  %v598_v56 = vld [vmem:[#allocation2 + $0x80] sm:$0xff] }
 0x189   :  { %v505_v13 = vsel %vm501_vm7, %v500_v62, %v494_v50  ;;  %v1035_v15 = vpack.c.bf16 %v588_v60, %v584_v4  ;;  %v503_v18 = vsel %vm501_vm7, %v496_v49, %v498_v10  ;;  %v502_v19 = vsel %vm501_vm7, %v498_v10, %v500_v62  ;;  %v602_v50 = vld [vmem:[#allocation2 + $0xa0] sm:$0xff] }
 0x18a   :  { %v532_v20 = vmul.f32 %v524_v53, %v505_v13  ;;  %v530_v35 = vmul.f32 %v516_v57, %v503_v18  ;;  %v531_v24 = vmul.f32 %v520_v58, %v502_v19  ;;  %1018 = vmatprep.subr.bf16.mxu0 %v1017_v14  ;;  %v564_v49 = vrot.slane %v1341_v51, %v1235_v43  ;;  %v600_v53 = vld [vmem:[#allocation2 + $0x90] sm:$0xff] }
 0x18b   :  { %1036 = vmatpush1.bf16.msra.mxu1 %v1035_v15  ;;  %1020 = vmatpush1.bf16.msra.mxu0 %v1019_v16  ;;  %v1043_v55 = vpack.c.bf16 %v604_v45, %v600_v53  ;;  %v1027_v51 = vpack.c.bf16 %v602_v50, %v598_v56  ;;  %v609_v58 = vld [vmem:[#allocation2 + $0xd8] sm:$0xff]  ;;  %v607_v61 = vld [vmem:[#allocation2 + $0xc8] sm:$0xff] }
 0x18c   :  { %536 = vst [vmem:[#allocation2 + $0xf8] sm:$0xf] %v532_v20  ;;  %1038 = vmatprep.subr.bf16.mxu1 %v1037_v21  ;;  %v540_v28 = vpop.permute.xlu0 %539  ;;  %534 = vst [vmem:[#allocation2 + $0xe8] sm:$0xf] %v530_v35  ;;  %v538_v37 = vpop.permute.xlu1 %537  ;;  %1022 = vmatprep.subr.bf16.mxu0 %v1021_v25 }
 0x18d   :  { %535 = vst [vmem:[#allocation2 + $0xf0] sm:$0xf] %v531_v24  ;;  %v548_v40 = vsel %vm545_vm8, %v538_v37, %v540_v28 }
 0x18e   :  { %v573_v46 = vmul.f32 %v556_v9, %v548_v40  ;;  %v608_v9 = vld [vmem:[#allocation2 + $0xd0] sm:$0xff] }
 0x18f   :  { %1040 = vmatpush1.bf16.msra.mxu1 %v1039_v31  ;;  %1024 = vmatpush1.bf16.msra.mxu0 %v1023_v39  ;;  %v610_v63 = vld [vmem:[#allocation2 + $0xe0] sm:$0xff] }
 0x190   :  { %1042 = vmatprep.subr.bf16.mxu1 %v1041_v38  ;;  %v544_v52 = vpop.permute.xlu0 %543  ;;  %577 = vst [vmem:[#allocation2 + $0x100] sm:$0xf] %v573_v46  ;;  %v542_v54 = vpop.permute.xlu1 %541  ;;  %1026 = vmatprep.subr.bf16.mxu0 %v1025_v48  ;;  %v1031_v15 = vpack.c.bf16 %v610_v63, %v606_v34  ;;  %v774_v31 = vld [vmem:[%s1421_s3] sm:$0xff] }
 0x191   :  { %v549_v36 = vsel %vm545_vm8, %v544_v52, %v538_v37  ;;  %v547_v42 = vsel %vm545_vm8, %v540_v28, %v542_v54  ;;  %v546_v57 = vsel %vm545_vm8, %v542_v54, %v544_v52 }
 0x192   :  { %v576_v43 = vmul.f32 %v568_v44, %v549_v36  ;;  %v574_v59 = vmul.f32 %v560_v47, %v547_v42  ;;  %v575_v60 = vmul.f32 %v564_v49, %v546_v57 }
 0x193   :  { %1044 = vmatpush1.bf16.msra.mxu1 %v1043_v55  ;;  %v613_v62 = vld [vmem:[#allocation2 + $0xf8] sm:$0xff]  ;;  %1028 = vmatpush1.bf16.msra.mxu0 %v1027_v51  ;;  %v611_v4 = vld [vmem:[#allocation2 + $0xe8] sm:$0xff] }
 0x194   :  { %580 = vst [vmem:[#allocation2 + $0x118] sm:$0xf] %v576_v43  ;;  %v1045_v8 = vpack.c.bf16 %v613_v62, %v609_v58  ;;  %v612_v10 = vld [vmem:[#allocation2 + $0xf0] sm:$0xff]  ;;  %578 = vst [vmem:[#allocation2 + $0x108] sm:$0xf] %v574_v59  ;;  %v1029_v13 = vpack.c.bf16 %v611_v4, %v607_v61 }
 0x195   :  { %579 = vst [vmem:[#allocation2 + $0x110] sm:$0xf] %v575_v60  ;;  %v1047_v14 = vpack.c.bf16 %v612_v10, %v608_v9 }
 0x196   :  { %1046 = vmatprep.subr.bf16.mxu1 %v1045_v8  ;;  %1030 = vmatprep.subr.bf16.mxu0 %v1029_v13 }
 0x197   :  { %1048 = vmatpush1.bf16.msra.mxu1 %v1047_v14  ;;  %1032 = vmatpush1.bf16.msra.mxu0 %v1031_v15  ;;  %v614_v20 = vld [vmem:[#allocation2 + $0x100] sm:$0xff] }
 0x19b   :  { %v617_v16 = vld [vmem:[#allocation2 + $0x118] sm:$0xff]  ;;  %v615_v18 = vld [vmem:[#allocation2 + $0x108] sm:$0xff] }
 0x19c   :  { %715 = vmatprep.subr.mxu1 %v617_v16  ;;  %v616_v19 = vld [vmem:[#allocation2 + $0x110] sm:$0xff]  ;;  %644 = vmatprep.subr.mxu0 %v615_v18 }
 0x19d   :  { %716 = vmatpush1.msra.mxu1 %v616_v19  ;;  %645 = vmatpush1.msra.mxu0 %v614_v20 }
 0x19e   :  { %1000 = vmatmul.mubr.msk.f32.vlgmr.msra.gmra.mrb[2].mxu1 %vm624_vm9, %v581_v17  ;;  %999 = vmatmul.mubr.msk.f32.vlgmr.msra.gmra.mrb[2].mxu0 %vm624_vm9, %v581_v17 }
 0x19f   :  { %949 = vmatprep.mubr.f32.mxu1 %v1061_v3  ;;  %872 = vmatprep.mubr.f32.mxu0 %v1061_v3 }
 0x1a1   :  { %v622_v21 = vpop.permute.xlu1 %621  ;;  %v781_v40 = vpop.permute.xlu0 %780 }
 0x1a5   :  { %v786_v50 = vpop.permute.xlu1 %785 }
 0x271   :  { %v765_v22 = vpop.f32.mrb[2].mxu1  ;;  %v694_v23 = vpop.f32.mrb[2].mxu0 }
 0x272   :  { %v766_v35 = vadd.f32 %v765_v22, %v622_v21  ;;  %v767_v24 = vpop.f32.mrb[3].mxu1  ;;  %v695_v25 = vadd.f32 %v694_v23, %v622_v21  ;;  %v696_v26 = vpop.f32.mrb[3].mxu0 }
 0x273   :  { %v768_v27 = vadd.f32 %v767_v24, %v622_v21  ;;  %v697_v28 = vadd.f32 %v696_v26, %v622_v21 }
 0x274   :  { %v772_v30 = vmax.f32 %v766_v35, 0.0  ;;  %v770_v32 = vmax.f32 %v695_v25, 0.0 }
 0x275   :  { %v773_v29 = vmax.f32 %v768_v27, 0.0  ;;  %v771_v37 = vmax.f32 %v697_v28, 0.0 }
 0x277   :  { %1005 = vmatprep.subr.msk.mxu1 %vm795_vm10, %v773_v29  ;;  %1001 = vmatprep.subr.msk.mxu0 %vm795_vm10, %v771_v37 }
 0x278   :  { %1006 = vmatpush1.msk.msra.mxu1 %vm795_vm10, %v772_v30  ;;  %1002 = vmatpush1.msk.msra.mxu0 %vm795_vm10, %v770_v32 }
 0x279   :  { %1007 = vmatmul.mubr.msk.f32.vlgmr.msra.gmra.mrb[4].mxu1 %vm788_vm11, %v774_v31  ;;  %1003 = vmatmul.mubr.msk.f32.vlgmr.msra.gmra.mrb[4].mxu0 %vm788_vm11, %v774_v31 }
 0x27a   :  { %955 = vmatprep.mubr.f32.mxu1 %v1061_v3  ;;  %878 = vmatprep.mubr.f32.mxu0 %v1061_v3 }
 0x27d   :  { %1008 = vmatmul.mubr.msk.f32.gmra.mrb[6].mxu1 %vm788_vm11, %v775_v33  ;;  %1004 = vmatmul.mubr.msk.f32.gmra.mrb[6].mxu0 %vm788_vm11, %v775_v33 }
 0x34c   :  { %v951_v39 = vpop.f32.mrb[4].mxu1  ;;  %v874_v38 = vpop.f32.mrb[4].mxu0 }
 0x34d   :  { %v952_v41 = vadd.f32 %v951_v39, %v781_v40  ;;  %v953_v44 = vpop.f32.mrb[5].mxu1  ;;  %v875_v45 = vadd.f32 %v874_v38, %v781_v40  ;;  %v876_v46 = vpop.f32.mrb[5].mxu0 }
 0x34e   :  { %v954_v47 = vadd.f32 %v953_v44, %v781_v40  ;;  %v877_v49 = vadd.f32 %v876_v46, %v781_v40 }
 0x34f   :  { %v964_v48 = vadd.f32 %v952_v41, %v1183_v11  ;;  %v962_v52 = vadd.f32 %v875_v45, %v1169_v6 }
 0x350   :  { %v965_v53 = vadd.f32 %v954_v47, %v1119_v2  ;;  %v957_v54 = vpop.f32.mrb[6].mxu1  ;;  %v963_v36 = vadd.f32 %v877_v49, %v1109_v0  ;;  %v880_v55 = vpop.f32.mrb[6].mxu0 }
 0x351   :  { %v972_v3 = vmax.f32 %v964_v48, 0.0  ;;  %v958_v56 = vadd.f32 %v957_v54, %v786_v50  ;;  %v959_v42 = vpop.f32.mrb[7].mxu1  ;;  %v970_v57 = vmax.f32 %v962_v52, 0.0  ;;  %v881_v51 = vadd.f32 %v880_v55, %v786_v50  ;;  %v882_v58 = vpop.f32.mrb[7].mxu0 }
 0x352   :  { %v973_v43 = vmax.f32 %v965_v53, 0.0  ;;  %v960_v59 = vadd.f32 %v959_v42, %v786_v50  ;;  %v971_v11 = vmax.f32 %v963_v36, 0.0  ;;  %v883_v2 = vadd.f32 %v882_v58, %v786_v50 }
 0x353   :  { %980 = vst [vmem:[%s1422_s6 + $0x10] sm:$0xff] %v972_v3  ;;  %v968_v6 = vadd.f32 %v958_v56, %v1188_v12  ;;  %978 = vst [vmem:[%s1422_s6] sm:$0xff] %v970_v57  ;;  %v966_v0 = vadd.f32 %v881_v51, %v1174_v7 }
 0x354   :  { %981 = vst [vmem:[%s1422_s6 + $0x18] sm:$0xff] %v973_v43  ;;  %v969_v60 = vadd.f32 %v960_v59, %v1164_v5  ;;  %979 = vst [vmem:[%s1422_s6 + $0x8] sm:$0xff] %v971_v11  ;;  %v967_v12 = vadd.f32 %v883_v2, %v1114_v1 }
 0x355   :  { %v976_v61 = vmax.f32 %v968_v6, 0.0  ;;  %v974_v62 = vmax.f32 %v966_v0, 0.0 }
 0x356   :  { %v977_v63 = vmax.f32 %v969_v60, 0.0  ;;  %v975_v4 = vmax.f32 %v967_v12, 0.0 }
 0x357   :  { %984 = vst [vmem:[%s1422_s6 + $0x30] sm:$0xff] %v976_v61  ;;  %982 = vst [vmem:[%s1422_s6 + $0x20] sm:$0xff] %v974_v62 }
 0x358   :  { %985 = vst [vmem:[%s1422_s6 + $0x38] sm:$0xff] %v977_v63  ;;  %983 = vst [vmem:[%s1422_s6 + $0x28] sm:$0xff] %v975_v4 }

</bundles_post_ra>
